<compile_context>
chip_gen: v5e
topology: v5e:2x2
jax: 0.10.0
libtpu: 0.0.40
codegen_flags: <defaults>
</compile_context>

<pallas_src>
import functools
import math

import jax
import jax.numpy as jnp
from jax.experimental import pallas as pl
from jax.experimental.pallas import tpu as pltpu

EMB_DIM = 32
HIDDEN = 512            # DIS_HIDDEN_LAYER_SIZES = (512,)
LEAKY_SLOPE = 0.01      # nn.LeakyReLU default
DEFAULT_BATCH_TILE = 2048


def _round_up(n: int, m: int) -> int:
    return ((n + m - 1) // m) * m


def dann_disc_kernel(x_ref, w1t_ref, b1_ref, w2r_ref, b2_ref, o_ref, *, compute_dtype):
    # In-kernel cast of the streamed x tile (VPU): avoids a separate wrapper-side HBM
    # convert pass over the only large input.
    xt = x_ref[...].astype(compute_dtype)                              # (TB, E)
    # Hidden layer computed transposed (batch on lanes):
    #   h_t[h, b] = sum_e W1[e, h] * x[b, e]
    # lhs (H, E) and rhs (TB, E) contracted on their last dims ("A @ B.T", the attention
    # q.k^T pattern) -> (H, TB), f32 accumulation on the MXU.
    h_t = jax.lax.dot_general(
        w1t_ref[...], xt, (((1,), (1,)), ((), ())),
        preferred_element_type=jnp.float32)                            # (H, TB) f32
    h_t = h_t + b1_ref[...]                                            # (H, 1) lane-broadcast
    h_t = jnp.where(h_t > 0, h_t, LEAKY_SLOPE * h_t)                   # LeakyReLU(0.01)
    # TODO(synk): Dropout omitted (eval/inference semantics -> identity); a train-mode
    # forward would need an in-kernel pltpu.prng_* mask.
    # Output layer Linear(H -> 1) as (1, H) x (H, TB): produces the lane-dense (1, TB)
    # output row directly (no column->row relayout, no masked stores).  M=1 MXU waste is
    # irrelevant -- the MXU has huge slack in this kernel.
    y = jnp.dot(w2r_ref[...], h_t, preferred_element_type=jnp.float32)  # (1, TB) f32
    y = y + b2_ref[0, 0]                                               # scalar bias from SMEM
    o_ref[0] = y.astype(o_ref.dtype)                                   # lane-dense (1, TB) store


def dann_discriminator(x, w1, b1, w2, b2, *,
                       batch_tile=DEFAULT_BATCH_TILE, use_bf16=True):
    """x: [B, E]; w1: [E, H]; b1: [1, H]; w2: [H, 1]; b2: [1, 1] -> [B, 1]."""
    B, E = x.shape
    H = w1.shape[1]
    assert w1.shape == (E, H) and b1.shape == (1, H)
    assert w2.shape == (H, 1) and b2.shape == (1, 1)

    out_dtype = x.dtype

    # Batch tile: big (default 2048) to amortize the ~0.35us fixed per-grid-step cost,
    # a multiple of 8 (sublane), never much bigger than the batch itself.
    tb = max(8, min(int(batch_tile), _round_up(B, 8)))
    # v7x: a single giant tile leaves one of the two TensorCores idle under
    # dimension_semantics=("parallel",); once halving still leaves >=512-row tiles,
    # force at least two grid steps.
    if B >= 1024 and pl.cdiv(B, tb) < 2:
        tb = _round_up(pl.cdiv(B, 2), 8)
    num_tiles = pl.cdiv(B, tb)

    # One-time tiny weight reshapes/casts (wrapper side); x itself is NOT touched here:
    # it streams into the kernel as-is and the bf16 cast happens per-tile on the VPU.
    if use_bf16:
        compute_dtype = jnp.bfloat16
        w1t = w1.T.astype(jnp.bfloat16)     # (H, E)
    else:
        compute_dtype = x.dtype
        w1t = w1.T                          # (H, E)
    b1c = b1.reshape(H, 1)                  # column: broadcasts over lanes in the kernel
    w2r = w2.reshape(1, H)                  # row: lhs of the (1,H) x (H,TB) output matmul

    kernel = functools.partial(dann_disc_kernel, compute_dtype=compute_dtype)

    # No jnp.pad: grid covers ceil(B / tb) tiles; the ragged last x block's DMA is clipped
    # by Pallas, its extra rows produce garbage outputs that are sliced off below.
    out_rows = pl.pallas_call(
        kernel,
        out_shape=jax.ShapeDtypeStruct((num_tiles, 1, tb), out_dtype),
        grid=(num_tiles,),
        in_specs=[
            # x: tiled over batch -> automatic double-buffered HBM->VMEM prefetch.
            pl.BlockSpec((tb, E), lambda i: (i, 0)),
            # Weights/biases: same block index every step -> stay resident in VMEM.
            pl.BlockSpec((H, E), lambda i: (0, 0)),
            pl.BlockSpec((H, 1), lambda i: (0, 0)),
            pl.BlockSpec((1, H), lambda i: (0, 0)),
            # b2: a single scalar in SMEM (no VMEM tile, no extra DMA stream).
            pl.BlockSpec(memory_space=pltpu.MemorySpace.SMEM),
        ],
        # Lane-dense (1, 1, tb) output blocks -> full-width unmasked stores.
        out_specs=pl.BlockSpec((1, 1, tb), lambda i: (i, 0, 0)),
        compiler_params=pltpu.CompilerParams(
            # Batch tiles are independent -> shard the grid across both TCs on v7x.
            dimension_semantics=("parallel",),
            # Raise v5e's 16 MiB default scoped VMEM; 32 MiB is the v6e/v7x default and
            # comfortably holds tb up to ~4096 (~8192 gets tight -- see header comment).
            vmem_limit_bytes=32 * 1024 * 1024,
        ),
    )(x, w1t, b1c, w2r, b2)

    # (num_tiles, 1, tb) -> (num_tiles*tb, 1) is a free row-major reshape; drop any
    # ragged-tail garbage rows.
    out = out_rows.reshape(num_tiles * tb, 1)
    return out[:B]


def init_params(key, emb_dim, hidden):
    """Deterministic PyTorch-style (Kaiming-uniform-ish) Linear init."""
    k1, k2, k3, k4 = jax.random.split(key, 4)
    bound1 = 1.0 / math.sqrt(emb_dim)
    w1 = jax.random.uniform(k1, (emb_dim, hidden), jnp.float32, -bound1, bound1)
    b1 = jax.random.uniform(k2, (1, hidden), jnp.float32, -bound1, bound1)
    bound2 = 1.0 / math.sqrt(hidden)
    w2 = jax.random.uniform(k3, (hidden, 1), jnp.float32, -bound2, bound2)
    b2 = jax.random.uniform(k4, (1, 1), jnp.float32, -bound2, bound2)
    return w1, b1, w2, b2


def reference(x, w1, b1, w2, b2, *, match_kernel_precision=True):
    """Pure-JAX reference. With match_kernel_precision, mirrors the kernel's
    bf16-operand / f32-accumulate first matmul."""
    if match_kernel_precision:
        xr, w1r = x.astype(jnp.bfloat16), w1.astype(jnp.bfloat16)
    else:
        xr, w1r = x, w1
    h = jnp.dot(xr, w1r, preferred_element_type=jnp.float32) + b1
    h = jnp.where(h > 0, h, LEAKY_SLOPE * h)
    return jnp.dot(h, w2, preferred_element_type=jnp.float32) + b2


if __name__ == "__main__":
    key = jax.random.PRNGKey(0)
    kx, kp, kx2 = jax.random.split(key, 3)

    w1, b1, w2, b2 = init_params(kp, EMB_DIM, HIDDEN)

    # --- Small primary check (tiny batch, single grid step) ---
    B = 8
    x = jax.random.normal(kx, (B, EMB_DIM), jnp.float32)
    out = jax.block_until_ready(dann_discriminator(x, w1, b1, w2, b2))
    assert out.shape == (B, 1), out.shape
    ref_matched = reference(x, w1, b1, w2, b2, match_kernel_precision=True)
    ref_f32 = reference(x, w1, b1, w2, b2, match_kernel_precision=False)
    assert jnp.allclose(out, ref_matched, atol=1e-3, rtol=1e-3), (out, ref_matched)
    # bf16 operands diverge from the pure-f32 path only at the ~1e-2 level.
    assert jnp.allclose(out, ref_f32, atol=5e-2, rtol=5e-2), (out, ref_f32)

    # --- Multi-tile + ragged-batch path (B not a multiple of the tile, no jnp.pad) ---
    B2 = 777
    x2 = jax.random.normal(kx2, (B2, EMB_DIM), jnp.float32)
    out2 = jax.block_until_ready(
        dann_discriminator(x2, w1, b1, w2, b2, batch_tile=256))
    assert out2.shape == (B2, 1), out2.shape
    ref2 = reference(x2, w1, b1, w2, b2, match_kernel_precision=True)
    assert jnp.allclose(out2, ref2, atol=1e-3, rtol=1e-3)

    print("KERNEL_OK")
</pallas_src>

<mosaic_0001>
module attributes {stable_mosaic.version = 11 : i64} {
  func.func @dann_disc_kernel(%arg0: i32, %arg1: memref<8x32xf32, #tpu.memory_space<vmem>>, %arg2: memref<512x32xbf16, #tpu.memory_space<vmem>>, %arg3: memref<512x1xf32, #tpu.memory_space<vmem>>, %arg4: memref<1x512xf32, #tpu.memory_space<vmem>>, %arg5: memref<1x1xf32, #tpu.memory_space<smem>>, %arg6: memref<1x1x8xf32, #tpu.memory_space<vmem>>) attributes {dimension_semantics = [#tpu.dimension_semantics<parallel>], iteration_bounds = array<i64: 1>, scalar_prefetch = 0 : i64, scratch_operands = 0 : i64, tpu.core_type = #tpu.core_type<tc>, window_params = [{transform_indices = @transform_0, window_bounds = array<i64: 8, 32>}, {pipeline_mode = #tpu.pipeline_mode<synchronous>, transform_indices = @transform_1, window_bounds = array<i64: 512, 32>}, {pipeline_mode = #tpu.pipeline_mode<synchronous>, transform_indices = @transform_2, window_bounds = array<i64: 512, 1>}, {pipeline_mode = #tpu.pipeline_mode<synchronous>, transform_indices = @transform_3, window_bounds = array<i64: 1, 512>}, {transform_indices = @transform_4, window_bounds = array<i64: 1, 1>}, {transform_indices = @transform_5, window_bounds = array<i64: 1, 1, 8>}]} {
    %c0 = arith.constant 0 : index
    %c0_0 = arith.constant 0 : index
    %0 = vector.load %arg1[%c0, %c0_0] : memref<8x32xf32, #tpu.memory_space<vmem>>, vector<8x32xf32>
    %1 = arith.truncf %0 : vector<8x32xf32> to vector<8x32xbf16>
    %c0_1 = arith.constant 0 : index
    %c0_2 = arith.constant 0 : index
    %2 = vector.load %arg2[%c0_1, %c0_2] : memref<512x32xbf16, #tpu.memory_space<vmem>>, vector<512x32xbf16>
    %cst = arith.constant dense<0.000000e+00> : vector<512x8xf32>
    %3 = tpu.matmul %2, %1, %cst {dimension_numbers = #tpu.dot_dimension_numbers<[1], [1], [0], [0], [0, 0, 1, 0], [], []>} : vector<512x32xbf16>, vector<8x32xbf16>, vector<512x8xf32> -> vector<512x8xf32>
    %c0_3 = arith.constant 0 : index
    %c0_4 = arith.constant 0 : index
    %4 = vector.load %arg3[%c0_3, %c0_4] : memref<512x1xf32, #tpu.memory_space<vmem>>, vector<512x1xf32>
    %5 = vector.broadcast %4 : vector<512x1xf32> to vector<512x8xf32>
    %6 = arith.addf %3, %5 : vector<512x8xf32>
    %cst_5 = arith.constant 0.000000e+00 : f32
    %7 = vector.broadcast %cst_5 : f32 to vector<512x8xf32>
    %8 = arith.cmpf ogt, %6, %7 : vector<512x8xf32>
    %cst_6 = arith.constant 0.00999999977 : f32
    %9 = vector.broadcast %cst_6 : f32 to vector<512x8xf32>
    %10 = arith.mulf %9, %6 : vector<512x8xf32>
    %11 = arith.select %8, %6, %10 : vector<512x8xi1>, vector<512x8xf32>
    %c0_7 = arith.constant 0 : index
    %c0_8 = arith.constant 0 : index
    %12 = vector.load %arg4[%c0_7, %c0_8] : memref<1x512xf32, #tpu.memory_space<vmem>>, vector<1x512xf32>
    %cst_9 = arith.constant dense<0.000000e+00> : vector<1x8xf32>
    %13 = tpu.matmul %12, %11, %cst_9 {dimension_numbers = #tpu.dot_dimension_numbers<[1], [0], [0], [1], [0, 0, 1, 1], [], []>} : vector<1x512xf32>, vector<512x8xf32>, vector<1x8xf32> -> vector<1x8xf32>
    %c0_10 = arith.constant 0 : index
    %c0_11 = arith.constant 0 : index
    %14 = memref.load %arg5[%c0_10, %c0_11] : memref<1x1xf32, #tpu.memory_space<smem>>
    %15 = vector.broadcast %14 : f32 to vector<1x8xf32>
    %16 = arith.addf %13, %15 : vector<1x8xf32>
    %c0_12 = arith.constant 0 : index
    %c0_13 = arith.constant 0 : index
    %c0_14 = arith.constant 0 : index
    %17 = vector.load %arg6[%c0_12, %c0_13, %c0_14] : memref<1x1x8xf32, #tpu.memory_space<vmem>>, vector<1x1x8xf32>
    %18 = vector.shape_cast %17 : vector<1x1x8xf32> to vector<1x8xf32>
    %19 = vector.shape_cast %16 : vector<1x8xf32> to vector<1x1x8xf32>
    tpu.vector_store %arg6[%c0_12, %c0_13, %c0_14], %19 {strides = array<i32>} : memref<1x1x8xf32, #tpu.memory_space<vmem>>, vector<1x1x8xf32>,
    return
  }
  func.func @transform_0(%arg0: i32) -> (i32, i32) {
    %c0_i32 = arith.constant 0 : i32
    %c0_i32_0 = arith.constant 0 : i32
    return %arg0, %c0_i32 : i32, i32
  }
  func.func @transform_1(%arg0: i32) -> (i32, i32) {
    %c0_i32 = arith.constant 0 : i32
    %c0_i32_0 = arith.constant 0 : i32
    %c0_i32_1 = arith.constant 0 : i32
    return %c0_i32, %c0_i32_0 : i32, i32
  }
  func.func @transform_2(%arg0: i32) -> (i32, i32) {
    %c0_i32 = arith.constant 0 : i32
    %c0_i32_0 = arith.constant 0 : i32
    %c0_i32_1 = arith.constant 0 : i32
    return %c0_i32, %c0_i32_0 : i32, i32
  }
  func.func @transform_3(%arg0: i32) -> (i32, i32) {
    %c0_i32 = arith.constant 0 : i32
    %c0_i32_0 = arith.constant 0 : i32
    %c0_i32_1 = arith.constant 0 : i32
    return %c0_i32, %c0_i32_0 : i32, i32
  }
  func.func @transform_4(%arg0: i32) -> (i32, i32) {
    %c0_i32 = arith.constant 0 : i32
    %c0_i32_0 = arith.constant 0 : i32
    %c0_i32_1 = arith.constant 0 : i32
    return %c0_i32, %c0_i32_0 : i32, i32
  }
  func.func @transform_5(%arg0: i32) -> (i32, i32, i32) {
    %c0_i32 = arith.constant 0 : i32
    %c0_i32_0 = arith.constant 0 : i32
    %c0_i32_1 = arith.constant 0 : i32
    return %arg0, %c0_i32, %c0_i32_0 : i32, i32, i32
  }
}

</mosaic_0001>

<bundles_post_ra>
// kernel: tpu_custom_call.1
= control target key start
LH: loop header
LB: loop body
LE: loop exit
PB: predicated region body
PF: predicated region fallthrough
CT: control target
= control target key end

     0   :  { %v1430_v3 = vmov 0   ;;  %vm633_vm0 = vcmask 261120   ;;  %s2158_s0 = inlined_call_operand.vmem [shape: f32[8,32], index: 0, kind: input, shape index: {}]   ;;  %s2159_s1 = inlined_call_operand.vmem [shape: bf16[512,32], index: 1, kind: input, shape index: {}]   ;;  %s2160_s2 = inlined_call_operand.vmem [shape: f32[512,1], index: 2, kind: input, shape index: {}]   ;;  %s2161_s3 = inlined_call_operand.vmem [shape: f32[1,512], index: 3, kind: input, shape index: {}]   ;;  %s2162_s4 = inlined_call_operand.<no memory space> [shape: f32[1,1], index: 4, kind: input, shape index: {}]   ;;  %s2163_s5 = inlined_call_operand.hbm [shape: f32[1,1,8], index: 5, kind: output, shape index: {}]  }
   0x1   :  { %v93_v0 = vld [vmem:[%s2160_s2 + $0x20] sm:$0xff]  ;;  %v91_v1 = vld [vmem:[%s2160_s2 + $0x10] sm:$0xff]  ;;  %1403 = vset.pattern.permute.xlu2 %v1430_v3  ;;  %1402 = vset.pattern.permute.xlu1 %v1430_v3  ;;  %v94_v7 = vld [vmem:[%s2160_s2 + $0x28] sm:$0xff] }
   0x2   :  { %v89_v2 = vld [vmem:[%s2160_s2] sm:$0xff]  ;;  %1401 = vset.pattern.permute.xlu0 %v1430_v3  ;;  %175 = vperm.xlu2 %1403, %v93_v0   ;;  %v92_v8 = vld [vmem:[%s2160_s2 + $0x18] sm:$0xff]  ;;  %v90_v9 = vld [vmem:[%s2160_s2 + $0x8] sm:$0xff] }
   0x3   :  { %v23_v4 = vld [vmem:[%s2158_s0] sm:$0xff]  ;;  %165 = vperm.xlu1 %1402, %v91_v1   ;;  %155 = vperm.xlu0 %1401, %v89_v2   ;;  %v1374_v11 = vld [vmem:[%s2159_s1 + $0x50] sm:$0xff] }
   0x4   :  { %v24_v5 = vpack.c.bf16 %v23_v4, %v23_v4  ;;  %v1364_v10 = vld [vmem:[%s2159_s1] sm:$0xff] }
   0x6   :  { %v731_v6 = vsel %vm633_vm0, %v24_v5, 0 }
   0x7   :  { %740 = vmatpush.bf16.xpose.msra.mxu0 %v731_v6  ;;  %1396 = vmatpush.bf16.xpose.msra.mxu1 %v731_v6 }
   0x8   :  { %1397 = vmatpush.bf16.xpose.msra.mxu2 %v731_v6  ;;  %1398 = vmatpush.bf16.xpose.msra.mxu3 %v731_v6 }
   0x9   :  { %11 = vsyncpa [#allocation4], 0  ;;  %v1378_v12 = vld [vmem:[%s2159_s1 + $0x70] sm:$0xff]  ;;  %v1387_v13 = vld [vmem:[%s2159_s1 + $0xb8] sm:$0xff]  ;;  %s1431_s30 = smov [#allocation3]   ;;  %s1195_s9 = sshll.u32 %s2163_s5, 4  ;;  %s1196_s9 = int_to_ptr.hbm [resolvable:$true] %s1195_s9 }
   0xa   :  { %180 = vperm.xlu2 %1403, %v94_v7   ;;  %v97_v14 = vld [vmem:[%s2160_s2 + $0x40] sm:$0xff]  ;;  %v96_v15 = vld [vmem:[%s2160_s2 + $0x38] sm:$0xff]  ;;  %v95_v16 = vld [vmem:[%s2160_s2 + $0x30] sm:$0xff]  ;;  %s1193_s6 = sshll.u32 %s1431_s30, 4  ;;  %s1194_s6 = int_to_ptr.vmem [resolvable:$true] %s1193_s6 }
   0xb   :  { %170 = vperm.xlu1 %1402, %v92_v8   ;;  %160 = vperm.xlu0 %1401, %v90_v9   ;;  %v100_v17 = vld [vmem:[%s2160_s2 + $0x58] sm:$0xff]  ;;  %v99_v18 = vld [vmem:[%s2160_s2 + $0x50] sm:$0xff]  ;;  %v98_v19 = vld [vmem:[%s2160_s2 + $0x48] sm:$0xff] }
   0xc   :  { %v1365_v20 = vld [vmem:[%s2159_s1 + $0x8] sm:$0xff]  ;;  %v1375_v21 = vld [vmem:[%s2159_s1 + $0x58] sm:$0xff]  ;;  %v1388_v23 = vld [vmem:[%s2159_s1 + $0xc0] sm:$0xff] }
   0xd   :  { %v1379_v22 = vld [vmem:[%s2159_s1 + $0x78] sm:$0xff]  ;;  %v103_v24 = vld [vmem:[%s2160_s2 + $0x70] sm:$0xff]  ;;  %v102_v25 = vld [vmem:[%s2160_s2 + $0x68] sm:$0xff] }
   0xe   :  { %1332 = vmatmul.msk.bf16.vlgmr.msra.gmra.mxu0 %vm633_vm0, %v1364_v10  ;;  %1342 = vmatmul.msk.bf16.vlgmr.msra.gmra.mxu1 %vm633_vm0, %v1374_v11  ;;  %v101_v26 = vld [vmem:[%s2160_s2 + $0x60] sm:$0xff]  ;;  %v106_v27 = vld [vmem:[%s2160_s2 + $0x88] sm:$0xff]  ;;  %v104_v29 = vld [vmem:[%s2160_s2 + $0x78] sm:$0xff] }
   0xf   :  { %1346 = vmatmul.msk.bf16.vlgmr.msra.gmra.mxu2 %vm633_vm0, %v1378_v12  ;;  %1355 = vmatmul.msk.bf16.vlgmr.msra.gmra.mxu3 %vm633_vm0, %v1387_v13  ;;  %v105_v28 = vld [vmem:[%s2160_s2 + $0x80] sm:$0xff]  ;;  %v1366_v30 = vld [vmem:[%s2159_s1 + $0x10] sm:$0xff]  ;;  %v1389_v33 = vld [vmem:[%s2159_s1 + $0xc8] sm:$0xff] }
  0x10   :  { %v1376_v31 = vld [vmem:[%s2159_s1 + $0x60] sm:$0xff]  ;;  %v108_v35 = vld [vmem:[%s2160_s2 + $0x98] sm:$0xff]  ;;  %v107_v36 = vld [vmem:[%s2160_s2 + $0x90] sm:$0xff] }
  0x11   :  { %v1380_v32 = vld [vmem:[%s2159_s1 + $0x80] sm:$0xff]  ;;  %v112_v37 = vld [vmem:[%s2160_s2 + $0xb8] sm:$0xff]  ;;  %v111_v38 = vld [vmem:[%s2160_s2 + $0xb0] sm:$0xff] }
  0x12   :  { %195 = vperm.xlu2 %1403, %v97_v14   ;;  %v109_v34 = vld [vmem:[%s2160_s2 + $0xa0] sm:$0xff]  ;;  %v110_v39 = vld [vmem:[%s2160_s2 + $0xa8] sm:$0xff]  ;;  %v1367_v40 = vld [vmem:[%s2159_s1 + $0x18] sm:$0xff] }
  0x13   :  { %190 = vperm.xlu1 %1402, %v96_v15   ;;  %185 = vperm.xlu0 %1401, %v95_v16   ;;  %v1377_v41 = vld [vmem:[%s2159_s1 + $0x68] sm:$0xff]  ;;  %v1390_v43 = vld [vmem:[%s2159_s1 + $0xd0] sm:$0xff]  ;;  %v113_v46 = vld [vmem:[%s2160_s2 + $0xc0] sm:$0xff] }
  0x14   :  { %v1381_v42 = vld [vmem:[%s2159_s1 + $0x88] sm:$0xff]  ;;  %v115_v44 = vld [vmem:[%s2160_s2 + $0xd0] sm:$0xff]  ;;  %v120_v47 = vld [vmem:[%s2160_s2 + $0xf8] sm:$0xff] }
  0x15   :  { %v114_v45 = vld [vmem:[%s2160_s2 + $0xc8] sm:$0xff]  ;;  %v117_v48 = vld [vmem:[%s2160_s2 + $0xe0] sm:$0xff]  ;;  %v116_v49 = vld [vmem:[%s2160_s2 + $0xd8] sm:$0xff] }
  0x16   :  { %v1368_v50 = vld [vmem:[%s2159_s1 + $0x20] sm:$0xff]  ;;  %v1382_v51 = vld [vmem:[%s2159_s1 + $0x90] sm:$0xff]  ;;  %v1391_v52 = vld [vmem:[%s2159_s1 + $0xd8] sm:$0xff] }
  0x17   :  { %v118_v53 = vld [vmem:[%s2160_s2 + $0xe8] sm:$0xff]  ;;  %v136_v54 = vld [vmem:[%s2160_s2 + $0x178] sm:$0xff]  ;;  %v119_v55 = vld [vmem:[%s2160_s2 + $0xf0] sm:$0xff] }
  0x18   :  { %v133_v56 = vld [vmem:[%s2160_s2 + $0x160] sm:$0xff]  ;;  %v134_v57 = vld [vmem:[%s2160_s2 + $0x168] sm:$0xff]  ;;  %v135_v58 = vld [vmem:[%s2160_s2 + $0x170] sm:$0xff] }
  0x19   :  { %v1369_v59 = vld [vmem:[%s2159_s1 + $0x28] sm:$0xff]  ;;  %v1383_v60 = vld [vmem:[%s2159_s1 + $0x98] sm:$0xff]  ;;  %v1392_v61 = vld [vmem:[%s2159_s1 + $0xe0] sm:$0xff] }
  0x1a   :  { %210 = vperm.xlu2 %1403, %v100_v17   ;;  %v131_v63 = vld [vmem:[%s2160_s2 + $0x150] sm:$0xff]  ;;  %v152_v0 = vld [vmem:[%s2160_s2 + $0x1f8] sm:$0xff]  ;;  %v150_v3 = vld [vmem:[%s2160_s2 + $0x1e8] sm:$0xff] }
  0x1b   :  { %205 = vperm.xlu1 %1402, %v99_v18   ;;  %200 = vperm.xlu0 %1401, %v98_v19   ;;  %v132_v1 = vld [vmem:[%s2160_s2 + $0x158] sm:$0xff]  ;;  %v130_v4 = vld [vmem:[%s2160_s2 + $0x148] sm:$0xff]  ;;  %v151_v5 = vld [vmem:[%s2160_s2 + $0x1f0] sm:$0xff] }
  0x1c   :  { %v1370_v6 = vld [vmem:[%s2159_s1 + $0x30] sm:$0xff]  ;;  %v1384_v7 = vld [vmem:[%s2159_s1 + $0xa0] sm:$0xff]  ;;  %v1393_v8 = vld [vmem:[%s2159_s1 + $0xe8] sm:$0xff] }
  0x1d   :  { %v128_v10 = vld [vmem:[%s2160_s2 + $0x138] sm:$0xff]  ;;  %v149_v11 = vld [vmem:[%s2160_s2 + $0x1e0] sm:$0xff]  ;;  %v147_v16 = vld [vmem:[%s2160_s2 + $0x1d0] sm:$0xff] }
  0x1e   :  { %1333 = vmatmul.msk.bf16.gmra.mxu0 %vm633_vm0, %v1365_v20  ;;  %1343 = vmatmul.msk.bf16.gmra.mxu1 %vm633_vm0, %v1375_v21  ;;  %v129_v12 = vld [vmem:[%s2160_s2 + $0x140] sm:$0xff]  ;;  %v127_v17 = vld [vmem:[%s2160_s2 + $0x130] sm:$0xff]  ;;  %v148_v18 = vld [vmem:[%s2160_s2 + $0x1d8] sm:$0xff] }
  0x1f   :  { %1347 = vmatmul.msk.bf16.gmra.mxu2 %vm633_vm0, %v1379_v22  ;;  %1356 = vmatmul.msk.bf16.gmra.mxu3 %vm633_vm0, %v1388_v23  ;;  %v1371_v19 = vld [vmem:[%s2159_s1 + $0x38] sm:$0xff]  ;;  %v1385_v20 = vld [vmem:[%s2159_s1 + $0xa8] sm:$0xff]  ;;  %v1394_v21 = vld [vmem:[%s2159_s1 + $0xf0] sm:$0xff] }
  0x22   :  { %225 = vperm.xlu2 %1403, %v103_v24  }
  0x23   :  { %220 = vperm.xlu1 %1402, %v102_v25   ;;  %215 = vperm.xlu0 %1401, %v101_v26   ;;  %v125_v25 = vld [vmem:[%s2160_s2 + $0x120] sm:$0xff]  ;;  %v146_v26 = vld [vmem:[%s2160_s2 + $0x1c8] sm:$0xff] }
  0x2a   :  { %240 = vperm.xlu2 %1403, %v106_v27   ;;  %v126_v27 = vld [vmem:[%s2160_s2 + $0x128] sm:$0xff] }
  0x2b   :  { %235 = vperm.xlu1 %1402, %v105_v28   ;;  %230 = vperm.xlu0 %1401, %v104_v29  }
  0x2e   :  { %1334 = vmatmul.msk.bf16.gmra.mxu0 %vm633_vm0, %v1366_v30  ;;  %1344 = vmatmul.msk.bf16.gmra.mxu1 %vm633_vm0, %v1376_v31  ;;  %v144_v31 = vld [vmem:[%s2160_s2 + $0x1b8] sm:$0xff] }
  0x2f   :  { %1348 = vmatmul.msk.bf16.gmra.mxu2 %vm633_vm0, %v1380_v32  ;;  %1357 = vmatmul.msk.bf16.gmra.mxu3 %vm633_vm0, %v1389_v33  ;;  %v124_v32 = vld [vmem:[%s2160_s2 + $0x118] sm:$0xff]  ;;  %v145_v33 = vld [vmem:[%s2160_s2 + $0x1c0] sm:$0xff] }
  0x32   :  { %255 = vperm.xlu2 %1403, %v109_v34   ;;  %v1372_v34 = vld [vmem:[%s2159_s1 + $0x40] sm:$0xff] }
  0x33   :  { %250 = vperm.xlu1 %1402, %v108_v35   ;;  %245 = vperm.xlu0 %1401, %v107_v36  }
  0x3a   :  { %270 = vperm.xlu2 %1403, %v112_v37   ;;  %v1386_v37 = vld [vmem:[%s2159_s1 + $0xb0] sm:$0xff] }
  0x3b   :  { %265 = vperm.xlu1 %1402, %v111_v38   ;;  %260 = vperm.xlu0 %1401, %v110_v39   ;;  %v1395_v38 = vld [vmem:[%s2159_s1 + $0xf8] sm:$0xff] }
  0x3e   :  { %1335 = vmatmul.msk.bf16.gmra.mxu0 %vm633_vm0, %v1367_v40  ;;  %1345 = vmatmul.msk.bf16.gmra.mxu1 %vm633_vm0, %v1377_v41 }
  0x3f   :  { %1349 = vmatmul.msk.bf16.gmra.mxu2 %vm633_vm0, %v1381_v42  ;;  %1358 = vmatmul.msk.bf16.gmra.mxu3 %vm633_vm0, %v1390_v43 }
  0x42   :  { %285 = vperm.xlu2 %1403, %v115_v44   ;;  %v122_v44 = vld [vmem:[%s2160_s2 + $0x108] sm:$0xff] }
  0x43   :  { %280 = vperm.xlu1 %1402, %v114_v45   ;;  %275 = vperm.xlu0 %1401, %v113_v46  }
  0x4a   :  { %310 = vperm.xlu2 %1403, %v120_v47   ;;  %v143_v47 = vld [vmem:[%s2160_s2 + $0x1b0] sm:$0xff] }
  0x4b   :  { %295 = vperm.xlu1 %1402, %v117_v48   ;;  %290 = vperm.xlu0 %1401, %v116_v49   ;;  %v123_v48 = vld [vmem:[%s2160_s2 + $0x110] sm:$0xff] }
  0x4e   :  { %1336 = vmatmul.msk.bf16.gmra.mxu0 %vm633_vm0, %v1368_v50 }
  0x4f   :  { %1350 = vmatmul.msk.bf16.gmra.mxu2 %vm633_vm0, %v1382_v51  ;;  %1359 = vmatmul.msk.bf16.gmra.mxu3 %vm633_vm0, %v1391_v52 }
  0x52   :  { %300 = vperm.xlu2 %1403, %v118_v53  }
  0x53   :  { %390 = vperm.xlu1 %1402, %v136_v54   ;;  %305 = vperm.xlu0 %1401, %v119_v55   ;;  %v141_v55 = vld [vmem:[%s2160_s2 + $0x1a0] sm:$0xff] }
  0x5a   :  { %375 = vperm.xlu2 %1403, %v133_v56  }
  0x5b   :  { %380 = vperm.xlu1 %1402, %v134_v57   ;;  %385 = vperm.xlu0 %1401, %v135_v58   ;;  %v121_v58 = vld [vmem:[%s2160_s2 + $0x100] sm:$0xff] }
  0x5c   :  { %v1660_v62 = vpop.permute.xlu2 %175 }
  0x5e   :  { %1337 = vmatmul.msk.bf16.gmra.mxu0 %vm633_vm0, %v1369_v59  ;;  %v142_v59 = vld [vmem:[%s2160_s2 + $0x1a8] sm:$0xff] }
  0x5f   :  { %1351 = vmatmul.msk.bf16.gmra.mxu2 %vm633_vm0, %v1383_v60  ;;  %1360 = vmatmul.msk.bf16.gmra.mxu3 %vm633_vm0, %v1392_v61  ;;  %v1373_v60 = vld [vmem:[%s2159_s1 + $0x48] sm:$0xff] }
  0x62   :  { %365 = vperm.xlu2 %1403, %v131_v63  }
  0x63   :  { %470 = vperm.xlu1 %1402, %v152_v0   ;;  %370 = vperm.xlu0 %1401, %v132_v1  }
  0x64   :  { %v1673_v2 = vpop.permute.xlu2 %180 }
  0x6a   :  { %460 = vperm.xlu2 %1403, %v150_v3  }
  0x6b   :  { %360 = vperm.xlu1 %1402, %v130_v4   ;;  %465 = vperm.xlu0 %1401, %v151_v5   ;;  %v138_v5 = vld [vmem:[%s2160_s2 + $0x188] sm:$0xff] }
  0x6c   :  { %v1694_v9 = vpop.permute.xlu2 %195 }
  0x6e   :  { %1338 = vmatmul.msk.bf16.gmra.mxu0 %vm633_vm0, %v1370_v6 }
  0x6f   :  { %1352 = vmatmul.msk.bf16.gmra.mxu2 %vm633_vm0, %v1384_v7  ;;  %1361 = vmatmul.msk.bf16.gmra.mxu3 %vm633_vm0, %v1393_v8  ;;  %v139_v8 = vld [vmem:[%s2160_s2 + $0x190] sm:$0xff] }
  0x72   :  { %350 = vperm.xlu2 %1403, %v128_v10   ;;  %v140_v10 = vld [vmem:[%s2160_s2 + $0x198] sm:$0xff] }
  0x73   :  { %455 = vperm.xlu1 %1402, %v149_v11   ;;  %355 = vperm.xlu0 %1401, %v129_v12  }
  0x74   :  { %v1707_v13 = vpop.permute.xlu2 %210 }
  0x75   :  { %v1709_v14 = vpop.permute.xlu1 %165  ;;  %v156_v15 = vpop.permute.xlu0 %155 }
  0x7a   :  { %445 = vperm.xlu2 %1403, %v147_v16  }
  0x7b   :  { %345 = vperm.xlu1 %1402, %v127_v17   ;;  %450 = vperm.xlu0 %1401, %v148_v18  }
  0x7c   :  { %v1730_v22 = vpop.permute.xlu2 %225 }
  0x7d   :  { %v1734_v23 = vpop.permute.xlu1 %170  ;;  %v161_v24 = vpop.permute.xlu0 %160 }
  0x7e   :  { %1339 = vmatmul.msk.bf16.gmra.mxu0 %vm633_vm0, %v1371_v19 }
  0x7f   :  { %1353 = vmatmul.msk.bf16.gmra.mxu2 %vm633_vm0, %v1385_v20  ;;  %1362 = vmatmul.msk.bf16.gmra.mxu3 %vm633_vm0, %v1394_v21  ;;  %v137_v20 = vld [vmem:[%s2160_s2 + $0x180] sm:$0xff] }
  0x82   :  { %335 = vperm.xlu2 %1403, %v125_v25  }
  0x83   :  { %440 = vperm.xlu1 %1402, %v146_v26   ;;  %340 = vperm.xlu0 %1401, %v126_v27  }
  0x84   :  { %v1745_v28 = vpop.permute.xlu2 %240 }
  0x85   :  { %v1747_v29 = vpop.permute.xlu1 %190  ;;  %v1749_v30 = vpop.permute.xlu0 %185 }
  0x8a   :  { %430 = vperm.xlu2 %1403, %v144_v31  }
  0x8b   :  { %v742_v35 = vpop.f32.mrf.mxu0  ;;  %v792_v36 = vpop.f32.mrf.mxu1  ;;  %330 = vperm.xlu1 %1402, %v124_v32   ;;  %435 = vperm.xlu0 %1401, %v145_v33  }
  0x8c   :  { %v1769_v39 = vadd.f32 %v742_v35, %v156_v15  ;;  %v256_v40 = vpop.permute.xlu2 %255 }
  0x8d   :  { %v1774_v41 = vadd.f32 %v792_v36, %v256_v40  ;;  %v1776_v42 = vpop.permute.xlu1 %205  ;;  %v1778_v43 = vpop.permute.xlu0 %200 }
  0x8e   :  { %1340 = vmatmul.msk.bf16.gmra.mxu0 %vm633_vm0, %v1372_v34 }
  0x8f   :  { %1354 = vmatmul.msk.bf16.gmra.mxu2 %vm633_vm0, %v1386_v37  ;;  %1363 = vmatmul.msk.bf16.gmra.mxu3 %vm633_vm0, %v1395_v38  ;;  %vm922_vm14 = vcmp.gt.f32.partialorder %v1774_v41, 0.0 }
  0x92   :  { %v1783_v45 = vpop.f32.mrf.mxu2  ;;  %v1785_v46 = vpop.f32.mrf.mxu3  ;;  %320 = vperm.xlu2 %1403, %v122_v44  }
  0x93   :  { %v744_v49 = vpop.f32.mrf.mxu0  ;;  %v1793_v50 = vpop.f32.mrf.mxu1  ;;  %425 = vperm.xlu1 %1402, %v143_v47   ;;  %325 = vperm.xlu0 %1401, %v123_v48  }
  0x94   :  { %v1795_v51 = vadd.f32 %v744_v49, %v161_v24  ;;  %v1797_v52 = vpop.permute.xlu2 %270 }
  0x95   :  { %v1799_v53 = vpop.permute.xlu1 %220  ;;  %v1801_v54 = vpop.permute.xlu0 %215 }
  0x9a   :  { %v814_v56 = vpop.f32.mrf.mxu2  ;;  %v1806_v57 = vpop.f32.mrf.mxu3  ;;  %415 = vperm.xlu2 %1403, %v141_v55  }
  0x9b   :  { %v747_v61 = vpop.f32.mrf.mxu0  ;;  %v1817_v63 = vpop.f32.mrf.mxu1  ;;  %315 = vperm.xlu1 %1402, %v121_v58   ;;  %420 = vperm.xlu0 %1401, %v142_v59  }
  0x9c   :  { %v1820_v0 = vadd.f32 %v747_v61, %v1709_v14  ;;  %v1823_v1 = vpop.permute.xlu2 %285 }
  0x9d   :  { %v1825_v3 = vpop.permute.xlu1 %235  ;;  %v1827_v4 = vpop.permute.xlu0 %230 }
  0x9e   :  { %1341 = vmatmul.msk.bf16.gmra.mxu0 %vm633_vm0, %v1373_v60 }
  0xa2   :  { %v817_v6 = vpop.f32.mrf.mxu2  ;;  %v1832_v7 = vpop.f32.mrf.mxu3  ;;  %400 = vperm.xlu2 %1403, %v138_v5  }
  0xa3   :  { %2164 = vst [vmem:[#allocation6_spill] sm:$0xff] %v1832_v7  ;;  %v749_v11 = vpop.f32.mrf.mxu0  ;;  %v1840_v12 = vpop.f32.mrf.mxu1  ;;  %405 = vperm.xlu1 %1402, %v139_v8   ;;  %410 = vperm.xlu0 %1401, %v140_v10  }
  0xa4   :  { %v1843_v14 = vadd.f32 %v749_v11, %v1734_v23  ;;  %v311_v17 = vpop.permute.xlu2 %310 }
  0xa5   :  { %v1845_v15 = vpop.permute.xlu1 %250  ;;  %v1847_v16 = vpop.permute.xlu0 %245 }
  0xaa   :  { %v819_v18 = vpop.f32.mrf.mxu2  ;;  %v1849_v19 = vpop.f32.mrf.mxu3 }
  0xab   :  { %2165 = vst [vmem:[#allocation7_spill] sm:$0xff] %v1849_v19  ;;  %v820_v21 = vadd.f32 %v819_v18, %v311_v17  ;;  %v1854_v24 = vpop.f32.mrf.mxu0  ;;  %v802_v23 = vpop.f32.mrf.mxu1  ;;  %395 = vperm.xlu0 %1401, %v137_v20  }
  0xac   :  { %v301_v58 = vpop.permute.xlu2 %300 }
  0xad   :  { %vm933_vm1 = vcmp.gt.f32.partialorder %v820_v21, 0.0  ;;  %v997_v25 = vmul.f32 0.01, %v820_v21  ;;  %v1856_v26 = vpop.permute.xlu1 %265  ;;  %v1858_v27 = vpop.permute.xlu0 %260  ;;  %v815_v8 = vadd.f32 %v814_v56, %v301_v58 }
  0xaf   :  { %v1061_v31 = vsel %vm933_vm1, %v820_v21, %v997_v25  ;;  %v995_v25 = vmul.f32 0.01, %v815_v8  ;;  %vm931_vm4 = vcmp.gt.f32.partialorder %v815_v8, 0.0 }
  0xb0   :  { %1126 = vmatpush.msrb.mxu2 %v1061_v31 }
  0xb2   :  { %v1860_v32 = vpop.f32.mrf.mxu2  ;;  %v1862_v33 = vpop.f32.mrf.mxu3 }
  0xb3   :  { %2166 = vst [vmem:[#allocation8_spill] sm:$0xff] %v1860_v32  ;;  %v1864_v34 = vpop.f32.mrf.mxu0  ;;  %v804_v35 = vpop.f32.mrf.mxu1 }
  0xb4   :  { %2167 = vst [vmem:[#allocation9_spill] sm:$0xff] %v1862_v33 }
  0xb5   :  { %v281_v36 = vpop.permute.xlu1 %280  ;;  %v276_v37 = vpop.permute.xlu0 %275 }
  0xba   :  { %v1866_v38 = vpop.f32.mrf.mxu2  ;;  %v1868_v40 = vpop.f32.mrf.mxu3 }
  0xbb   :  { %2168 = vst [vmem:[#allocation10_spill] sm:$0xff] %v1866_v38  ;;  %v757_v44 = vpop.f32.mrf.mxu0  ;;  %v807_v48 = vpop.f32.mrf.mxu1 }
  0xbc   :  { %2169 = vst [vmem:[#allocation11_spill] sm:$0xff] %v1868_v40  ;;  %v1871_v47 = vadd.f32 %v757_v44, %v1749_v30  ;;  %v808_v56 = vadd.f32 %v807_v48, %v1823_v1  ;;  %v800_v1 = vadd.f32 %v1840_v12, %v1797_v52  ;;  %v795_v12 = vadd.f32 %v1793_v50, %v1858_v27 }
  0xbd   :  { %v296_v49 = vpop.permute.xlu1 %295  ;;  %v291_v55 = vpop.permute.xlu0 %290  ;;  %v986_v27 = vmul.f32 0.01, %v1774_v41 }
  0xbe   :  { %v813_v18 = vadd.f32 %v1783_v45, %v296_v49  ;;  %v992_v33 = vmul.f32 0.01, %v808_v56  ;;  %vm928_vm7 = vcmp.gt.f32.partialorder %v808_v56, 0.0  ;;  %vm925_vm11 = vcmp.gt.f32.partialorder %v800_v1, 0.0 }
  0xbf   :  { %vm923_vm13 = vcmp.gt.f32.partialorder %v795_v12, 0.0 }
  0xc0   :  { %v994_v49 = vmul.f32 0.01, %v813_v18  ;;  %vm930_vm5 = vcmp.gt.f32.partialorder %v813_v18, 0.0 }
  0xc2   :  { %v1873_v59 = vpop.f32.mrf.mxu2  ;;  %v1875_v60 = vpop.f32.mrf.mxu3  ;;  %v1058_v19 = vsel %vm930_vm5, %v813_v18, %v994_v49  ;;  %v989_v18 = vmul.f32 0.01, %v800_v1 }
  0xc3   :  { %2170 = vst [vmem:[#allocation12_spill] sm:$0xff] %v1873_v59  ;;  %v759_v61 = vpop.f32.mrf.mxu0  ;;  %v809_v10 = vpop.f32.mrf.mxu1 }
  0xc4   :  { %2171 = vst [vmem:[#allocation13_spill] sm:$0xff] %v1875_v60  ;;  %v1878_v5 = vadd.f32 %v759_v61, %v1747_v29  ;;  %v810_v21 = vadd.f32 %v809_v10, %v291_v55 }
  0xc5   :  { %v391_v11 = vpop.permute.xlu1 %390  ;;  %v306_v17 = vpop.permute.xlu0 %305 }
  0xc6   :  { %v860_v30 = vadd.f32 %v1806_v57, %v391_v11  ;;  %v818_v20 = vadd.f32 %v817_v6, %v306_v17  ;;  %v805_v57 = vadd.f32 %v804_v35, %v281_v36  ;;  %v1059_v6 = vsel %vm931_vm4, %v815_v8, %v995_v25 }
  0xc7   :  { %v993_v55 = vmul.f32 0.01, %v810_v21  ;;  %vm929_vm6 = vcmp.gt.f32.partialorder %v810_v21, 0.0  ;;  %v803_v11 = vadd.f32 %v802_v23, %v276_v37  ;;  %v1056_v23 = vsel %vm928_vm7, %v808_v56, %v992_v33 }
  0xc8   :  { %vm932_vm2 = vcmp.gt.f32.partialorder %v818_v20, 0.0  ;;  %v996_v7 = vmul.f32 0.01, %v818_v20  ;;  %vm949_vm3 = vcmp.gt.f32.partialorder %v860_v30, 0.0  ;;  %v1013_v29 = vmul.f32 0.01, %v860_v30 }
  0xc9   :  { %v1057_v35 = vsel %vm929_vm6, %v810_v21, %v993_v55  ;;  %v991_v8 = vmul.f32 0.01, %v805_v57  ;;  %vm927_vm9 = vcmp.gt.f32.partialorder %v805_v57, 0.0  ;;  %v990_v52 = vmul.f32 0.01, %v803_v11 }
  0xca   :  { %v1882_v31 = vpop.f32.mrf.mxu2  ;;  %v1884_v44 = vpop.f32.mrf.mxu3  ;;  %v1060_v58 = vsel %vm932_vm2, %v818_v20, %v996_v7  ;;  %v1077_v45 = vsel %vm949_vm3, %v860_v30, %v1013_v29  ;;  %vm926_vm10 = vcmp.gt.f32.partialorder %v803_v11, 0.0  ;;  %v987_v33 = vmul.f32 0.01, %v795_v12 }
  0xcb   :  { %2172 = vst [vmem:[#allocation14_spill] sm:$0xff] %v1882_v31  ;;  %v1886_v61 = vpop.f32.mrf.mxu0  ;;  %1127 = vmatpush.msrb.mxu2 %v1060_v58  ;;  %1146 = vmatpush.msrb.mxu3 %v1077_v45  ;;  %v1054_v20 = vsel %vm926_vm10, %v803_v11, %v990_v52  ;;  %v1909_v58 = vpop.permute.xlu2 %375  ;;  %vm902_vm6 = vcmp.gt.f32.partialorder %v1769_v39, 0.0  ;;  %vm909_vm10 = vcmp.gt.f32.partialorder %v1878_v5, 0.0 }
  0xcc   :  { %2173 = vst [vmem:[#allocation15_spill] sm:$0xff] %v1884_v44  ;;  %v1051_v45 = vsel %vm923_vm13, %v795_v12, %v987_v33 }
  0xcd   :  { %v386_v10 = vpop.permute.xlu0 %385  ;;  %1128 = vmatpush.msrb.mxu2 %v1059_v6  ;;  %v1906_v29 = vpop.permute.xlu1 %380 }
  0xce   :  { %v858_v17 = vadd.f32 %v1785_v46, %v386_v10  ;;  %v798_v46 = vadd.f32 %v1817_v63, %v1856_v26  ;;  %v1053_v26 = vsel %vm925_vm11, %v800_v1, %v989_v18  ;;  %vm905_vm11 = vcmp.gt.f32.partialorder %v1843_v14, 0.0 }
  0xcf   :  { %1129 = vmatpush.msrb.mxu2 %v1058_v19  ;;  %v1055_v19 = vsel %vm927_vm9, %v805_v57, %v991_v8  ;;  %v1050_v57 = vsel %vm922_vm14, %v1774_v41, %v986_v27  ;;  %vm904_vm9 = vcmp.gt.f32.partialorder %v1820_v0, 0.0 }
  0xd0   :  { %vm948_vm8 = vcmp.gt.f32.partialorder %v858_v17, 0.0  ;;  %v1012_v36 = vmul.f32 0.01, %v858_v17  ;;  %v988_v21 = vmul.f32 0.01, %v798_v46  ;;  %vm924_vm12 = vcmp.gt.f32.partialorder %v798_v46, 0.0 }
  0xd1   :  { %1130 = vmatpush.msrb.mxu2 %v1057_v35 }
  0xd2   :  { %v1892_v7 = vpop.f32.mrf.mxu2  ;;  %v1894_v48 = vpop.f32.mrf.mxu3  ;;  %v1076_v37 = vsel %vm948_vm8, %v858_v17, %v1012_v36  ;;  %v1052_v50 = vsel %vm924_vm12, %v798_v46, %v988_v21  ;;  %vm903_vm8 = vcmp.gt.f32.partialorder %v1795_v51, 0.0  ;;  %vm908_vm12 = vcmp.gt.f32.partialorder %v1871_v47, 0.0 }
  0xd3   :  { %2174 = vst [vmem:[#allocation16_spill] sm:$0xff] %v1894_v48  ;;  %v1896_v30 = vpop.f32.mrf.mxu0  ;;  %1131 = vmatpush.msrb.mxu2 %v1056_v23  ;;  %1147 = vmatpush.msrb.mxu3 %v1076_v37  ;;  %v1921_v17 = vpop.permute.xlu2 %365 }
  0xd4   :  { %v765_v31 = vadd.f32 %v1896_v30, %v1778_v43  ;;  %v753_v43 = vadd.f32 %v1854_v24, %v1660_v62  ;;  %v755_v62 = vadd.f32 %v1864_v34, %v1673_v2  ;;  %v972_v2 = vmul.f32 0.01, %v1871_v47 }
  0xd5   :  { %1132 = vmatpush.msrb.mxu2 %v1055_v19  ;;  %v1912_v49 = vpop.permute.xlu0 %370  ;;  %v1919_v11 = vpop.permute.xlu1 %470 }
  0xd6   :  { %vm911_vm5 = vcmp.gt.f32.partialorder %v765_v31, 0.0  ;;  %v970_v34 = vmul.f32 0.01, %v753_v43  ;;  %vm906_vm13 = vcmp.gt.f32.partialorder %v753_v43, 0.0  ;;  %vm907_vm14 = vcmp.gt.f32.partialorder %v755_v62, 0.0 }
  0xd7   :  { %1133 = vmatpush.msrb.mxu2 %v1054_v20 }
  0xd9   :  { %1134 = vmatpush.msrb.mxu2 %v1053_v26 }
  0xda   :  { %v1902_v25 = vpop.f32.mrf.mxu2  ;;  %v1904_v63 = vpop.f32.mrf.mxu3 }
  0xdb   :  { %2175 = vst [vmem:[#allocation17_spill] sm:$0xff] %v1904_v63  ;;  %v767_v56 = vpop.f32.mrf.mxu0  ;;  %1135 = vmatpush.msrb.mxu2 %v1052_v50  ;;  %v1931_v41 = vpop.permute.xlu2 %460 }
  0xdd   :  { %1136 = vmatpush.msrb.mxu2 %v1051_v45  ;;  %v1923_v1 = vpop.permute.xlu0 %465  ;;  %v1929_v46 = vpop.permute.xlu1 %360 }
  0xdf   :  { %1137 = vmatpush.msrb.mxu2 %v1050_v57 }
  0xe2   :  { %v1915_v6 = vpop.f32.mrf.mxu2  ;;  %v1917_v55 = vpop.f32.mrf.mxu3 }
  0xe3   :  { %2176 = vst [vmem:[#allocation18_spill] sm:$0xff] %v1917_v55  ;;  %v769_v10 = vpop.f32.mrf.mxu0  ;;  %v1945_v26 = vpop.permute.xlu2 %350 }
  0xe5   :  { %v1937_v52 = vpop.permute.xlu0 %355  ;;  %v1939_v19 = vpop.permute.xlu1 %455 }
  0xea   :  { %v1925_v35 = vpop.f32.mrf.mxu2  ;;  %v1927_v36 = vpop.f32.mrf.mxu3 }
  0xeb   :  { %v772_v8 = vpop.f32.mrf.mxu0  ;;  %v1958_v32 = vpop.permute.xlu2 %445 }
  0xec   :  { %v773_v48 = vadd.f32 %v772_v8, %v1801_v54 }
  0xed   :  { %v1947_v33 = vpop.permute.xlu0 %450  ;;  %v1954_v40 = vpop.permute.xlu1 %345 }
  0xee   :  { %v978_v54 = vmul.f32 0.01, %v773_v48  ;;  %vm914_vm2 = vcmp.gt.f32.partialorder %v773_v48, 0.0 }
  0xf2   :  { %v1933_v23 = vpop.f32.mrf.mxu2  ;;  %v1935_v37 = vpop.f32.mrf.mxu3 }
  0xf3   :  { %v774_v12 = vpop.f32.mrf.mxu0 }
  0xf4   :  { %v775_v60 = vadd.f32 %v774_v12, %v1799_v53  ;;  %v768_v53 = vadd.f32 %v767_v56, %v1776_v42  ;;  %v763_v42 = vadd.f32 %v1886_v61, %v1694_v9  ;;  %v1042_v56 = vsel %vm914_vm2, %v773_v48, %v978_v54 }
  0xf5   :  { %v1961_v59 = vpop.permute.xlu0 %340  ;;  %v973_v54 = vmul.f32 0.01, %v1878_v5 }
  0xf6   :  { %v979_v55 = vmul.f32 0.01, %v775_v60  ;;  %vm915_vm1 = vcmp.gt.f32.partialorder %v775_v60, 0.0  ;;  %vm912_vm4 = vcmp.gt.f32.partialorder %v768_v53, 0.0  ;;  %v974_v61 = vmul.f32 0.01, %v763_v42 }
  0xf7   :  { %vm910_vm7 = vcmp.gt.f32.partialorder %v763_v42, 0.0 }
  0xfa   :  { %v1941_v18 = vpop.f32.mrf.mxu2  ;;  %v1943_v20 = vpop.f32.mrf.mxu3 }
  0xfb   :  { %v777_v21 = vpop.f32.mrf.mxu0 }
  0xfc   :  { %v778_v50 = vadd.f32 %v777_v21, %v1730_v22  ;;  %v770_v22 = vadd.f32 %v769_v10, %v1707_v13  ;;  %v1043_v13 = vsel %vm915_vm1, %v775_v60, %v979_v55  ;;  %v976_v10 = vmul.f32 0.01, %v768_v53 }
  0xfd   :  { %v967_v55 = vmul.f32 0.01, %v1795_v51 }
  0xfe   :  { %v980_v63 = vmul.f32 0.01, %v778_v50  ;;  %vm916_vm0 = vcmp.gt.f32.partialorder %v778_v50, 0.0  ;;  %vm913_vm3 = vcmp.gt.f32.partialorder %v770_v22, 0.0  ;;  %v1040_v9 = vsel %vm912_vm4, %v768_v53, %v976_v10 }
  0xff   :  { %v969_v53 = vmul.f32 0.01, %v1843_v14 }
 0x102   :  { %v1950_v27 = vpop.f32.mrf.mxu2  ;;  %v1952_v45 = vpop.f32.mrf.mxu3 }
 0x103   :  { %v779_v57 = vpop.f32.mrf.mxu0 }
 0x104   :  { %v780_v44 = vadd.f32 %v779_v57, %v1827_v4  ;;  %v1044_v57 = vsel %vm916_vm0, %v778_v50, %v980_v63  ;;  %v336_v63 = vpop.permute.xlu2 %335 }
 0x106   :  { %vm917_vm15 = vcmp.gt.f32.partialorder %v780_v44, 0.0  ;;  %v981_v38 = vmul.f32 0.01, %v780_v44 }
 0x108   :  { %v1045_v21 = vsel %vm917_vm15, %v780_v44, %v981_v38  ;;  %v977_v38 = vmul.f32 0.01, %v770_v22  ;;  %v1975_v44 = vpop.permute.xlu1 %440 }
 0x109   :  { %1106 = vmatpush.msrb.mxu1 %v1045_v21  ;;  %v975_v21 = vmul.f32 0.01, %v765_v31 }
 0x10a   :  { %v1965_v12 = vpop.f32.mrf.mxu2  ;;  %v1967_v4 = vpop.f32.mrf.mxu3  ;;  %v1041_v50 = vsel %vm913_vm3, %v770_v22, %v977_v38  ;;  %v966_v22 = vmul.f32 0.01, %v1769_v39  ;;  %v840_v38 = vadd.f32 %v1925_v35, %v1945_v26  ;;  %v2009_v35 = vsel %vm903_vm8, %v1795_v51, %v967_v55 }
 0x10b   :  { %v1969_v8 = vpop.f32.mrf.mxu0  ;;  %1107 = vmatpush.msrb.mxu1 %v1044_v57  ;;  %v1977_v57 = vpop.permute.xlu0 %435  ;;  %v1039_v24 = vsel %vm911_vm5, %v765_v31, %v975_v21  ;;  %v838_v31 = vadd.f32 %v1915_v6, %v1954_v40  ;;  %v971_v21 = vmul.f32 0.01, %v755_v62  ;;  %v1033_v6 = vsel %vm905_vm11, %v1843_v14, %v969_v53 }
 0x10c   :  { %v2014_v26 = vsel %vm902_vm6, %v1769_v39, %v966_v22  ;;  %v2024_v51 = vadd.f32 %v1892_v7, %v336_v63  ;;  %v1036_v39 = vsel %vm908_vm12, %v1871_v47, %v972_v2  ;;  %vm941_vm15 = vcmp.gt.f32.partialorder %v840_v38, 0.0 }
 0x10d   :  { %1108 = vmatpush.msrb.mxu1 %v1043_v13  ;;  %v968_v13 = vmul.f32 0.01, %v1820_v0  ;;  %v1004_v22 = vmul.f32 0.01, %v838_v31  ;;  %v2038_v7 = vadd.f32 %v1935_v37, %v1958_v32  ;;  %vm940_vm0 = vcmp.gt.f32.partialorder %v838_v31, 0.0 }
 0x10e   :  { %v2050_v32 = vmul.f32 0.01, %v2024_v51  ;;  %vm938_vm8 = vcmp.gt.f32.partialorder %v2024_v51, 0.0 }
 0x10f   :  { %1109 = vmatpush.msrb.mxu1 %v1042_v56  ;;  %v1038_v56 = vsel %vm910_vm7, %v763_v42, %v974_v61  ;;  %v2026_v42 = vpop.permute.xlu2 %430  ;;  %v1034_v61 = vsel %vm906_vm13, %v753_v43, %v970_v34  ;;  %v1035_v43 = vsel %vm907_vm14, %v755_v62, %v971_v21 }
 0x110   :  { %v2003_v10 = vpop.permute.xlu1 %330 }
 0x111   :  { %1110 = vmatpush.msrb.mxu1 %v1041_v50  ;;  %v1037_v50 = vsel %vm909_vm10, %v1878_v5, %v973_v54  ;;  %v1032_v5 = vsel %vm904_vm9, %v1820_v0, %v968_v13  ;;  %v2034_v0 = vadd.f32 %v1933_v23, %v1937_v52  ;;  %v845_v23 = vadd.f32 %v1941_v18, %v1929_v46 }
 0x112   :  { %v852_v60 = vpop.f32.mrf.mxu2  ;;  %v1981_v30 = vpop.f32.mrf.mxu3  ;;  %v2053_v54 = vsel %vm940_vm0, %v838_v31, %v1004_v22  ;;  %v2062_v18 = vadd.f32 %v1902_v25, %v1961_v59  ;;  %v2069_v13 = vadd.f32 %v1943_v20, %v1947_v33  ;;  %v895_v59 = vadd.f32 %v1967_v4, %v1931_v41  ;;  %v2085_v41 = vld [vmem:[%s2161_s3] sm:$0xf] }
 0x113   :  { %v1984_v48 = vpop.f32.mrf.mxu0  ;;  %1111 = vmatpush.msrb.mxu1 %v1040_v9  ;;  %v853_v40 = vadd.f32 %v852_v60, %v1909_v58  ;;  %v1005_v58 = vmul.f32 0.01, %v840_v38  ;;  %v850_v60 = vadd.f32 %v1965_v12, %v1912_v49  ;;  %v2040_v47 = vpop.permute.xlu0 %325  ;;  %vm942_vm4 = vcmp.gt.f32.partialorder %v2034_v0, 0.0  ;;  %v2178_v22 = vld [vmem:[#allocation18_spill] sm:$0xff] }
 0x114   :  { %v1006_v46 = vmul.f32 0.01, %v2034_v0  ;;  %vm943_vm6 = vcmp.gt.f32.partialorder %v845_v23, 0.0  ;;  %v1007_v2 = vmul.f32 0.01, %v845_v23  ;;  %v893_v20 = vadd.f32 %v1952_v45, %v1939_v19 }
 0x115   :  { %1112 = vmatpush.msrb.mxu1 %v1039_v24  ;;  %v1010_v12 = vmul.f32 0.01, %v853_v40  ;;  %vm946_vm2 = vcmp.gt.f32.partialorder %v853_v40, 0.0  ;;  %v2047_v52 = vsel %vm941_vm15, %v840_v38, %v1005_v58  ;;  %v1009_v24 = vmul.f32 0.01, %v850_v60 }
 0x116   :  { %vm945_vm3 = vcmp.gt.f32.partialorder %v850_v60, 0.0  ;;  %v785_v33 = vadd.f32 %v1984_v48, %v1745_v28  ;;  %v783_v4 = vadd.f32 %v1969_v8, %v1825_v3  ;;  %v1098_v28 = vperm.slane %v2085_v41, 0 }
 0x117   :  { %1113 = vmatpush.msrb.mxu1 %v1038_v56  ;;  %v321_v34 = vpop.permute.xlu2 %320  ;;  %v1071_v3 = vsel %vm943_vm6, %v845_v23, %v1007_v2  ;;  %vm963_vm12 = vcmp.gt.f32.partialorder %v895_v59, 0.0  ;;  %vm962_vm14 = vcmp.gt.f32.partialorder %v893_v20, 0.0  ;;  %v1025_v58 = vmul.f32 0.01, %v2069_v13  ;;  %v2181_v23 = vld [vmem:[#allocation10_spill] sm:$0xff] }
 0x118   :  { %v2071_v38 = vpop.permute.xlu1 %425  ;;  %vm919_vm13 = vcmp.gt.f32.partialorder %v785_v33, 0.0  ;;  %vm918_vm15 = vcmp.gt.f32.partialorder %v783_v4, 0.0  ;;  %vm939_vm0 = vcmp.gt.f32.partialorder %v2062_v18, 0.0 }
 0x119   :  { %1114 = vmatpush.msrb.mxu1 %v1037_v50  ;;  %v1027_v50 = vmul.f32 0.01, %v895_v59 }
 0x11a   :  { %v854_v9 = vpop.f32.mrf.mxu2  ;;  %v899_v63 = vpop.f32.mrf.mxu3 }
 0x11b   :  { %v855_v55 = vadd.f32 %v854_v9, %v1906_v29  ;;  %v787_v14 = vpop.f32.mrf.mxu0  ;;  %1115 = vmatpush.msrb.mxu1 %v1036_v39  ;;  %v848_v29 = vadd.f32 %v1950_v27, %v1921_v17  ;;  %v900_v37 = vadd.f32 %v899_v63, %v1919_v11  ;;  %v2056_v17 = vmul.f32 0.01, %v2038_v7  ;;  %v2093_v45 = vpop.permute.xlu0 %420 }
 0x11c   :  { %v898_v11 = vadd.f32 %v1981_v30, %v1923_v1  ;;  %v1074_v27 = vsel %vm946_vm2, %v853_v40, %v1010_v12  ;;  %v788_v56 = vadd.f32 %v787_v14, %v1847_v16  ;;  %v1073_v30 = vsel %vm945_vm3, %v850_v60, %v1009_v24  ;;  %v2177_v60 = vld [vmem:[#allocation14_spill] sm:$0xff] }
 0x11d   :  { %1116 = vmatpush.msrb.mxu1 %v1035_v43  ;;  %vm947_vm1 = vcmp.gt.f32.partialorder %v855_v55, 0.0  ;;  %v1011_v49 = vmul.f32 0.01, %v855_v55  ;;  %v1008_v53 = vmul.f32 0.01, %v848_v29  ;;  %vm944_vm5 = vcmp.gt.f32.partialorder %v848_v29, 0.0 }
 0x11e   :  { %v1029_v25 = vmul.f32 0.01, %v900_v37  ;;  %vm965_vm7 = vcmp.gt.f32.partialorder %v900_v37, 0.0  ;;  %v1028_v31 = vmul.f32 0.01, %v898_v11  ;;  %vm964_vm10 = vcmp.gt.f32.partialorder %v898_v11, 0.0 }
 0x11f   :  { %1117 = vmatpush.msrb.mxu1 %v1034_v61  ;;  %v1075_v62 = vsel %vm947_vm1, %v855_v55, %v1011_v49  ;;  %v1072_v19 = vsel %vm944_vm5, %v848_v29, %v1008_v53  ;;  %v984_v48 = vmul.f32 0.01, %v788_v56  ;;  %vm920_vm11 = vcmp.gt.f32.partialorder %v788_v56, 0.0  ;;  %v2180_v49 = vld [vmem:[#allocation17_spill] sm:$0xff] }
 0x120   :  { %1148 = vmatpush.msrb.mxu3 %v1075_v62  ;;  %v1093_v8 = vsel %vm965_vm7, %v900_v37, %v1029_v25  ;;  %v983_v40 = vmul.f32 0.01, %v785_v33  ;;  %v982_v39 = vmul.f32 0.01, %v783_v4  ;;  %v1003_v61 = vmul.f32 0.01, %v2062_v18  ;;  %v416_v37 = vpop.permute.xlu2 %415 }
 0x121   :  { %1118 = vmatpush.msrb.mxu1 %v1033_v6  ;;  %v885_v6 = vadd.f32 %v1927_v36, %v1975_v44  ;;  %v1048_v9 = vsel %vm920_vm11, %v788_v56, %v984_v48  ;;  %v830_v55 = vadd.f32 %v2177_v60, %v2003_v10  ;;  %v1091_v36 = vsel %vm963_vm12, %v895_v59, %v1027_v50  ;;  %v316_v44 = vpop.permute.xlu1 %315  ;;  %v2179_v10 = vld [vmem:[#allocation12_spill] sm:$0xff] }
 0x122   :  { %1149 = vmatpush.msrb.mxu3 %v1074_v27  ;;  %v1047_v14 = vsel %vm919_vm13, %v785_v33, %v983_v40  ;;  %vm961_vm1 = vcmp.gt.f32.partialorder %v2069_v13, 0.0  ;;  %vm960_vm2 = vcmp.gt.f32.partialorder %v2038_v7, 0.0  ;;  %v828_v63 = vadd.f32 %v2179_v10, %v2040_v47  ;;  %v2182_v27 = vld [vmem:[#allocation16_spill] sm:$0xff] }
 0x123   :  { %v789_v1 = vpop.f32.mrf.mxu0  ;;  %1119 = vmatpush.msrb.mxu1 %v1032_v5  ;;  %v1026_v5 = vmul.f32 0.01, %v893_v20  ;;  %v1099_v29 = vperm.slane %v2085_v41, 1  ;;  %v880_v12 = vadd.f32 %v2180_v49, %v2026_v42  ;;  %v1046_v62 = vsel %vm918_vm15, %v783_v4, %v982_v39  ;;  %v411_v42 = vpop.permute.xlu0 %410 }
 0x124   :  { %v790_v16 = vadd.f32 %v789_v1, %v1845_v15  ;;  %1150 = vmatpush.msrb.mxu3 %v1073_v30  ;;  %v1067_v47 = vsel %vm939_vm0, %v2062_v18, %v1003_v61  ;;  %v1089_v24 = vsel %vm961_vm1, %v2069_v13, %v1025_v58  ;;  %vm937_vm3 = vcmp.gt.f32.partialorder %v830_v55, 0.0  ;;  %v2183_v13 = vld [vmem:[#allocation8_spill] sm:$0xff]  ;;  %v2185_v30 = vld [vmem:[#allocation13_spill] sm:$0xff]  ;;  %v2189_v61 = vld [vmem:[#allocation6_spill] sm:$0xff] }
 0x125   :  { %1120 = vmatpush.msrb.mxu1 %v2009_v35  ;;  %v1070_v35 = vsel %vm942_vm4, %v2034_v0, %v1006_v46  ;;  %v883_v0 = vadd.f32 %v2178_v22, %v1977_v57  ;;  %v1090_v43 = vsel %vm962_vm14, %v893_v20, %v1026_v5  ;;  %v1023_v57 = vmul.f32 0.01, %v885_v6 }
 0x126   :  { %1151 = vmatpush.msrb.mxu3 %v1072_v19  ;;  %vm921_vm9 = vcmp.gt.f32.partialorder %v790_v16, 0.0  ;;  %v985_v15 = vmul.f32 0.01, %v790_v16  ;;  %v1001_v46 = vmul.f32 0.01, %v830_v55  ;;  %vm959_vm4 = vcmp.gt.f32.partialorder %v885_v6, 0.0 }
 0x127   :  { %1121 = vmatpush.msrb.mxu1 %v2014_v26  ;;  %v1092_v26 = vsel %vm964_vm10, %v898_v11, %v1028_v31  ;;  %v1088_v11 = vsel %vm960_vm2, %v2038_v7, %v2056_v17  ;;  %v1022_v18 = vmul.f32 0.01, %v883_v0  ;;  %v878_v53 = vadd.f32 %v2182_v27, %v2071_v38  ;;  %v2186_v19 = vld [vmem:[#allocation11_spill] sm:$0xff] }
 0x128   :  { %1152 = vmatpush.msrb.mxu3 %v1071_v3  ;;  %v1049_v21 = vsel %vm921_vm9, %v790_v16, %v985_v15  ;;  %1122 = vmatmul.f32.vlgmr.msrb.gmra.mxu1 %v1098_v28  ;;  %v823_v56 = vadd.f32 %v2183_v13, %v316_v44  ;;  %v1000_v59 = vmul.f32 0.01, %v828_v63  ;;  %v1021_v25 = vmul.f32 0.01, %v880_v12  ;;  %v401_v48 = vpop.permute.xlu2 %400  ;;  %v2187_v3 = vld [vmem:[#allocation9_spill] sm:$0xff] }
 0x129   :  { %1166 = vmatpush.msra.mxu1 %v1093_v8  ;;  %1138 = vmatpush.msrb.mxu2 %v1049_v21  ;;  %vm936_vm5 = vcmp.gt.f32.partialorder %v828_v63, 0.0  ;;  %vm958_vm6 = vcmp.gt.f32.partialorder %v883_v0, 0.0  ;;  %vm957_vm7 = vcmp.gt.f32.partialorder %v880_v12, 0.0  ;;  %v1065_v7 = vsel %vm937_vm3, %v830_v55, %v1001_v46  ;;  %v406_v16 = vpop.permute.xlu1 %405 }
 0x12a   :  { %1153 = vmatpush.msrb.mxu3 %v1070_v35  ;;  %v1087_v17 = vsel %vm959_vm4, %v885_v6, %v1023_v57  ;;  %v873_v2 = vadd.f32 %v2185_v30, %v416_v37  ;;  %v1020_v38 = vmul.f32 0.01, %v878_v53  ;;  %v1086_v20 = vsel %vm958_vm6, %v883_v0, %v1022_v18  ;;  %v2188_v6 = vld [vmem:[#allocation7_spill] sm:$0xff] }
 0x12b   :  { %1167 = vmatpush.msra.mxu1 %v1092_v26  ;;  %1139 = vmatpush.msrb.mxu2 %v1048_v9  ;;  %v998_v33 = vmul.f32 0.01, %v823_v56  ;;  %v1085_v4 = vsel %vm957_vm7, %v880_v12, %v1021_v25  ;;  %vm934_vm9 = vcmp.gt.f32.partialorder %v823_v56, 0.0  ;;  %vm956_vm10 = vcmp.gt.f32.partialorder %v878_v53, 0.0  ;;  %v396_v40 = vpop.permute.xlu0 %395 }
 0x12c   :  { %1154 = vmatpush.msrb.mxu3 %v2047_v52  ;;  %v825_v52 = vadd.f32 %v2181_v23, %v321_v34  ;;  %v1064_v34 = vsel %vm936_vm5, %v828_v63, %v1000_v59  ;;  %v870_v28 = vadd.f32 %v2186_v19, %v411_v42  ;;  %v1100_v15 = vperm.slane %v2085_v41, 2 }
 0x12d   :  { %1168 = vmatpush.msra.mxu1 %v1091_v36  ;;  %1140 = vmatpush.msrb.mxu2 %v1047_v14  ;;  %v1018_v50 = vmul.f32 0.01, %v873_v2  ;;  %v868_v8 = vadd.f32 %v2187_v3, %v406_v16  ;;  %v1062_v21 = vsel %vm934_vm9, %v823_v56, %v998_v33  ;;  %v1084_v35 = vsel %vm956_vm10, %v878_v53, %v1020_v38 }
 0x12e   :  { %1155 = vmatpush.msrb.mxu3 %v2053_v54  ;;  %v1066_v54 = vsel %vm938_vm8, %v2024_v51, %v2050_v32  ;;  %v2184_v51 = vld [vmem:[#allocation15_spill] sm:$0xff]  ;;  %v999_v1 = vmul.f32 0.01, %v825_v52  ;;  %vm935_vm8 = vcmp.gt.f32.partialorder %v825_v52, 0.0  ;;  %vm954_vm12 = vcmp.gt.f32.partialorder %v873_v2, 0.0 }
 0x12f   :  { %1169 = vmatpush.msra.mxu1 %v1090_v43  ;;  %1141 = vmatpush.msrb.mxu2 %v1046_v62  ;;  %v875_v32 = vadd.f32 %v2184_v51, %v2093_v45  ;;  %v865_v5 = vadd.f32 %v2188_v6, %v401_v48  ;;  %v1017_v26 = vmul.f32 0.01, %v870_v28  ;;  %vm953_vm13 = vcmp.gt.f32.partialorder %v870_v28, 0.0 }
 0x130   :  { %1156 = vmatpush.msrb.mxu3 %v1067_v47  ;;  %1142 = vmatmul.f32.vlgmr.msrb.gmra.mxu2 %v1099_v29  ;;  %v1063_v45 = vsel %vm935_vm8, %v825_v52, %v999_v1  ;;  %v1016_v39 = vmul.f32 0.01, %v868_v8  ;;  %v863_v58 = vadd.f32 %v2189_v61, %v396_v40  ;;  %v1082_v60 = vsel %vm954_vm12, %v873_v2, %v1018_v50 }
 0x131   :  { %1170 = vmatpush.msra.mxu1 %v1089_v24  ;;  %v1019_v31 = vmul.f32 0.01, %v875_v32  ;;  %vm955_vm11 = vcmp.gt.f32.partialorder %v875_v32, 0.0  ;;  %vm952_vm14 = vcmp.gt.f32.partialorder %v868_v8, 0.0  ;;  %v1015_v55 = vmul.f32 0.01, %v865_v5 }
 0x132   :  { %1157 = vmatpush.msrb.mxu3 %v1066_v54  ;;  %v1081_v36 = vsel %vm953_vm13, %v870_v28, %v1017_v26  ;;  %vm951_vm15 = vcmp.gt.f32.partialorder %v865_v5, 0.0  ;;  %v1014_v44 = vmul.f32 0.01, %v863_v58  ;;  %v1080_v14 = vsel %vm952_vm14, %v868_v8, %v1016_v39 }
 0x133   :  { %1171 = vmatpush.msra.mxu1 %v1088_v11  ;;  %v1083_v9 = vsel %vm955_vm11, %v875_v32, %v1019_v31  ;;  %vm950_vm0 = vcmp.gt.f32.partialorder %v863_v58, 0.0  ;;  %v1079_v22 = vsel %vm951_vm15, %v865_v5, %v1015_v55  ;;  %v1101_v0 = vperm.slane %v2085_v41, 3 }
 0x134   :  { %1158 = vmatpush.msrb.mxu3 %v1065_v7  ;;  %v1078_v10 = vsel %vm950_vm0, %v863_v58, %v1014_v44  ;;  %v1096_v63 = vstv %s2162_s4  ;;  %vm1186_vm1 = vcmask 57344  }
 0x135   :  { %1172 = vmatpush.msra.mxu1 %v1087_v17 }
 0x136   :  { %1159 = vmatpush.msrb.mxu3 %v1064_v34 }
 0x137   :  { %1173 = vmatpush.msra.mxu1 %v1086_v20 }
 0x138   :  { %1160 = vmatpush.msrb.mxu3 %v1063_v45 }
 0x139   :  { %1174 = vmatpush.msra.mxu1 %v1085_v4 }
 0x13a   :  { %1161 = vmatpush.msrb.mxu3 %v1062_v21 }
 0x13b   :  { %1175 = vmatpush.msra.mxu1 %v1084_v35  ;;  %1162 = vmatmul.f32.vlgmr.msrb.gmra.mxu3 %v1100_v15 }
 0x13d   :  { %1176 = vmatpush.msra.mxu1 %v1083_v9 }
 0x13f   :  { %1177 = vmatpush.msra.mxu1 %v1082_v60 }
 0x141   :  { %1178 = vmatpush.msra.mxu1 %v1081_v36 }
 0x143   :  { %1179 = vmatpush.msra.mxu1 %v1080_v14 }
 0x145   :  { %1180 = vmatpush.msra.mxu1 %v1079_v22 }
 0x147   :  { %1181 = vmatpush.msra.mxu1 %v1078_v10 }
 0x148   :  { %1182 = vmatmul.f32.vlgmr.msra.gmra.mxu1 %v1101_v0 }
 0x1a5   :  { %v1123_v43 = vpop.f32.mrf.mxu1 }
 0x1a6   :  { %v1124_v29 = vadd.f32 %v1123_v43, %v1096_v63 }
 0x1b3   :  { %v1143_v49 = vpop.f32.mrf.mxu2 }
 0x1b4   :  { %v1144_v12 = vadd.f32 %v1143_v49, %v1124_v29 }
 0x1be   :  { %v1163_v23 = vpop.f32.mrf.mxu3 }
 0x1bf   :  { %v1164_v41 = vadd.f32 %v1163_v23, %v1144_v12 }
 0x1c5   :  { %v1183_v52 = vpop.f32.mrf.mxu1 }
 0x1c6   :  { %v1184_v37 = vadd.f32 %v1183_v52, %v1164_v41 }
 0x1c8   :  { %1187 = vst.msk [vmem:[#allocation3] sm:$0x1] %vm1186_vm1, %v1184_v37 }
 0x1c9   :  { %1198 = dma.vmem_to_hbm [thread:$0]  %s1194_s6, 16, %s1196_s9, [#allocation4]  }
 0x1ca   :  { %1428 = dma.done.wait [#allocation4], 16  }
 0x1cb   :  { %1429 = vsyncadd [#allocation4], 4294967280 }
 0x1cc   :  { %1203 = vsyncpa [#allocation4], 1 }

</bundles_post_ra>
